<compile_context>
chip_gen: v7x
topology: tpu7x:2x2x1
jax: 0.10.0
libtpu: 0.0.40
codegen_flags: <defaults>
</compile_context>

<pallas_src>
import functools

import numpy as np
import jax
import jax.numpy as jnp
from jax.experimental import pallas as pl
from jax.experimental.pallas import tpu as pltpu


def _round_up(n, m):
    return ((n + m - 1) // m) * m


# ----------------------------------------------------------------------------
# Pallas kernels
# ----------------------------------------------------------------------------
def _scatter_kernel(idx_ref, feat_ref, out_ref, acc_ref, *, compute_dtype):
    """Tiled one-hot-matmul scatter, channel-major / lane-dense output.

    grid     : (B, N_tiles, P_tiles)   — reduction (P) axis last.
    idx_ref  : (1, TILE_P, 1) int32    flat position per point (-1 => dropped)
    feat_ref : (1, C, TILE_P) float32  point features, channel-major
    out_ref  : (1, C, TILE_N) float32  dense output tile (lane-dense last dim)
    acc_ref  : (C, TILE_N)    float32  VMEM accumulator scratch
    """
    n_tile = pl.program_id(1)
    p_step = pl.program_id(2)

    @pl.when(p_step == 0)
    def _():
        acc_ref[...] = jnp.zeros_like(acc_ref)

    tile_p = idx_ref.shape[1]
    tile_n = out_ref.shape[2]

    idx = idx_ref[0]                                               # (TILE_P, 1)
    col = jax.lax.broadcasted_iota(jnp.int32, (tile_p, tile_n), 1)  # (TILE_P, TILE_N)
    # one-hot[p, n] = 1 iff idx[p] == n_tile*TILE_N + n ; idx==-1 never matches.
    onehot = ((idx - n_tile * tile_n) == col).astype(compute_dtype)
    feats = feat_ref[0].astype(compute_dtype)                      # (C, TILE_P)
    acc_ref[...] += jnp.dot(feats, onehot,
                            preferred_element_type=jnp.float32)    # (C, TILE_N)

    @pl.when(p_step == pl.num_programs(2) - 1)
    def _():
        out_ref[0] = acc_ref[...].astype(out_ref.dtype)


def scatter_rows_cm(idx, feat_cm, n_out, *, tile_n=1024, tile_p=512,
                    compute_dtype=jnp.bfloat16):
    """out[b, :, idx[b, p]] = feat_cm[b, :, p]; zeros elsewhere.

    idx     : (B, P) int32 in [-1, n_out) — must be unique per batch (dedupe upstream)
    feat_cm : (B, C, P) float32 channel-major features
    returns : (B, C, n_out) float32
    """
    B, P = idx.shape
    C = feat_cm.shape[1]
    tile_p = min(tile_p, _round_up(P, 128))
    tile_n = min(tile_n, _round_up(n_out, 128))
    P_pad = _round_up(P, tile_p)
    N_pad = _round_up(n_out, tile_n)
    if P_pad != P:
        idx = jnp.pad(idx, ((0, 0), (0, P_pad - P)), constant_values=-1)
        feat_cm = jnp.pad(feat_cm, ((0, 0), (0, 0), (0, P_pad - P)))
    idx3 = idx.reshape(B, P_pad, 1).astype(jnp.int32)

    out = pl.pallas_call(
        functools.partial(_scatter_kernel, compute_dtype=compute_dtype),
        out_shape=jax.ShapeDtypeStruct((B, C, N_pad), jnp.float32),
        grid_spec=pltpu.PrefetchScalarGridSpec(
            num_scalar_prefetch=0,
            grid=(B, N_pad // tile_n, P_pad // tile_p),
            in_specs=[
                pl.BlockSpec((1, tile_p, 1), lambda b, n, p: (b, p, 0)),
                pl.BlockSpec((1, C, tile_p), lambda b, n, p: (b, 0, p)),
            ],
            out_specs=pl.BlockSpec((1, C, tile_n), lambda b, n, p: (b, 0, n)),
            scratch_shapes=[pltpu.VMEM((C, tile_n), jnp.float32)],
        ),
        compiler_params=pltpu.CompilerParams(
            dimension_semantics=("parallel", "parallel", "arbitrary")),
    )(idx3, feat_cm.astype(jnp.float32))
    return out[:, :, :n_out]


def _conv1x1_relu_kernel(x_ref, w_ref, o_ref):
    """1x1 conv + ReLU on a channel-major spatial tile.

    x_ref : (1, Cin, TILE_M) ; w_ref : (Cout, Cin) ; o_ref : (1, Cout, TILE_M)
    Cin is tiny (5) so the contraction runs as VPU broadcast-FMAs instead of a
    nearly-empty (K=5) MXU pass.
    """
    x = x_ref[0]                              # (Cin, TILE_M)
    w = w_ref[...]                            # (Cout, Cin)
    cin = x.shape[0]
    acc = w[:, 0:1] * x[0:1, :]               # (Cout, TILE_M)
    for k in range(1, cin):                   # static unroll; Cin is small
        acc = acc + w[:, k:k + 1] * x[k:k + 1, :]
    o_ref[0] = jnp.maximum(acc, 0.0)


def conv1x1_relu_cm(x_nhwc, w, *, tile_m=512):
    """x_nhwc: (B, H, W, Cin), w: (Cin, Cout) -> (B, Cout, H, W), ReLU."""
    B, H, W, Cin = x_nhwc.shape
    Cout = w.shape[1]
    HW = H * W
    tile_m = min(tile_m, _round_up(HW, 128))
    HW_pad = _round_up(HW, tile_m)
    x_cm = jnp.transpose(x_nhwc.reshape(B, HW, Cin), (0, 2, 1))       # (B, Cin, HW)
    if HW_pad != HW:
        x_cm = jnp.pad(x_cm, ((0, 0), (0, 0), (0, HW_pad - HW)))
    w_t = jnp.transpose(w).astype(jnp.float32)                        # (Cout, Cin)

    out = pl.pallas_call(
        _conv1x1_relu_kernel,
        out_shape=jax.ShapeDtypeStruct((B, Cout, HW_pad), jnp.float32),
        grid_spec=pltpu.PrefetchScalarGridSpec(
            num_scalar_prefetch=0,
            grid=(B, HW_pad // tile_m),
            in_specs=[
                pl.BlockSpec((1, Cin, tile_m), lambda b, m: (b, 0, m)),
                pl.BlockSpec((Cout, Cin), lambda b, m: (0, 0)),        # resident weight
            ],
            out_specs=pl.BlockSpec((1, Cout, tile_m), lambda b, m: (b, 0, m)),
        ),
        compiler_params=pltpu.CompilerParams(
            dimension_semantics=("parallel", "parallel")),
    )(x_cm.astype(jnp.float32), w_t)
    return out[:, :, :HW].reshape(B, Cout, H, W)


# ----------------------------------------------------------------------------
# Device-side glue (all inside jit — no host round trips)
# ----------------------------------------------------------------------------
def _keep_last(flat_idx, valid, num_segments):
    """Mask keeping only the LAST occurrence of each index (numpy/torch
    fancy-assignment semantics with duplicate indices)."""
    n = flat_idx.shape[0]
    order = jnp.arange(n, dtype=jnp.int32)
    seg = jnp.where(valid, flat_idx, num_segments)
    winner = jax.ops.segment_max(order, seg, num_segments=num_segments + 1)
    safe = jnp.clip(flat_idx, 0, num_segments)
    return valid & (winner[safe] == order)


def _group_by_batch(batch_ids, flat_idx, feats, B, P_cap):
    """Pack rows into per-batch slots (device-side, no Python loop).

    Returns idx (B, P_cap) int32 (-1 padding) and feats_cm (B, C, P_cap) f32.
    """
    M = batch_ids.shape[0]
    C = feats.shape[1]
    onehot_b = (batch_ids[None, :] ==
                jnp.arange(B, dtype=jnp.int32)[:, None]).astype(jnp.int32)  # (B, M)
    slot = jnp.cumsum(onehot_b, axis=1)[batch_ids, jnp.arange(M)] - 1        # (M,)
    idx_out = jnp.full((B, P_cap), -1, jnp.int32)
    idx_out = idx_out.at[batch_ids, slot].set(flat_idx.astype(jnp.int32))
    feat_out = jnp.zeros((B, P_cap, C), jnp.float32)
    feat_out = feat_out.at[batch_ids, slot].set(feats.astype(jnp.float32))
    return idx_out, jnp.transpose(feat_out, (0, 2, 1))                       # (B, C, P_cap)


@functools.partial(jax.jit, static_argnames=(
    "B", "P_cap_pillar", "P_cap_laser", "nx", "ny", "nz",
    "y_range", "x_range", "res", "compute_dtype"))
def _forward_impl(coords, pillar_features, laser_range_in, rangenet_w,
                  laser_x, laser_y, laser_points, *,
                  B, P_cap_pillar, P_cap_laser, nx, ny, nz,
                  y_range, x_range, res, compute_dtype):
    num_pillar_features = pillar_features.shape[1]

    # ---------------- pillar scatter -> dense BEV (Pallas scatter kernel) ----
    n_out = nz * nx * ny
    b_ids = coords[:, 0].astype(jnp.int32)
    flat = (coords[:, 1] + coords[:, 2] * nx + coords[:, 3]).astype(jnp.int32)
    keep = _keep_last(b_ids * n_out + flat,
                      jnp.ones(flat.shape[0], dtype=bool), B * n_out)
    idx_b, feat_cm = _group_by_batch(b_ids, jnp.where(keep, flat, -1),
                                     pillar_features, B, P_cap_pillar)
    dense = scatter_rows_cm(idx_b, feat_cm, n_out,
                            compute_dtype=compute_dtype)                # (B, C, n_out)
    batch_spatial_features = dense.reshape(B, num_pillar_features * nz, ny, nx)

    # ---------------- range-image branch --------------------------------------
    # TODO(synk): RangeNet (encoder/decoder), ChannelAttention and SpatialAttention
    # are not defined in the reference source; the stand-in is a deterministic
    # 1x1-conv + ReLU (Pallas kernel) producing the 64-channel map gen_bev_map uses.
    out_cm = conv1x1_relu_cm(laser_range_in, rangenet_w)                 # (B, Cout, H, W)
    Cout = out_cm.shape[1]
    h = int(round((x_range[1] - x_range[0]) / res))
    w = int(round((y_range[1] - y_range[0]) / res))

    # NOTE: assumes laser_x / laser_y / laser_points are row-aligned (same batch
    # column, same per-batch ordering) — the same assumption the reference makes.
    pb_ids = laser_points[:, 0].astype(jnp.int32)
    xs = laser_points[:, 1]
    ys = laser_points[:, 2]
    zs = laser_points[:, 3]
    x_pix = laser_x[:, -1].astype(jnp.int32)
    y_pix = laser_y[:, -1].astype(jnp.int32)
    # device-side gather of output[b, :, y, x]  -> (M, Cout)
    feat_pts = out_cm[pb_ids, :, y_pix, x_pix]

    # gen_bev_map index math (faithful to the reference).
    filt = ((xs > x_range[0]) & (xs < x_range[1]) &
            (ys > y_range[0]) & (ys < y_range[1]))
    x_img = (-ys / res).astype(jnp.int32) - int(np.floor(y_range[0] / res))
    y_img = (-xs / res).astype(jnp.int32) + int(np.ceil(x_range[1] / res))
    x_img = jnp.clip(x_img, 0, int((y_range[1] - y_range[0]) / res - 1))
    y_img = jnp.clip(y_img, 0, int((x_range[1] - x_range[0]) / res - 1))
    # NOTE: the reference compares METRIC coords against PIXEL extents here;
    # reproduced exactly on purpose.
    filt2 = (xs >= 0) & (xs < h) & (ys >= 0) & (ys < w)
    valid = filt & filt2
    z_c = jnp.clip(zs, -2.0, 4.0)
    feats_scaled = z_c[:, None] * feat_pts                               # (M, Cout)

    # flatten as (w, h)-major so reshape(B, C, w, h) matches the reference's
    # im[x_img, y_img] followed by permute(2, 1, 0)  ==  [c, y_img, x_img].
    flat_bev = y_img * h + x_img
    keep2 = _keep_last(pb_ids * (h * w) + flat_bev, valid, B * h * w)
    idx_b2, feat_cm2 = _group_by_batch(pb_ids, jnp.where(keep2, flat_bev, -1),
                                       feats_scaled, B, P_cap_laser)
    bev = scatter_rows_cm(idx_b2, feat_cm2, h * w,
                          compute_dtype=compute_dtype)                   # (B, Cout, w*h)
    bevs = bev.reshape(B, Cout, w, h)

    return jnp.concatenate([batch_spatial_features, bevs], axis=1)


# ----------------------------------------------------------------------------
# Forward pass (mirrors PointPillarScatter_range_image.forward)
# ----------------------------------------------------------------------------
def pointpillar_scatter_range_image_forward(batch_dict, *, nx, ny, nz, rangenet_w,
                                            y_range=(-2.0, 2.0), x_range=(0.0, 4.0),
                                            res=0.25, compute_dtype=jnp.bfloat16):
    assert nz == 1
    coords = jnp.asarray(batch_dict['voxel_coords'])
    pillar_features = jnp.asarray(batch_dict['pillar_features'], jnp.float32)
    laser_range_in = jnp.asarray(batch_dict['laser_range_in'], jnp.float32)
    laser_x = jnp.asarray(batch_dict['laser_x'], jnp.float32)
    laser_y = jnp.asarray(batch_dict['laser_y'], jnp.float32)
    laser_points = jnp.asarray(batch_dict['laser_points'], jnp.float32)

    # Only three TINY scalar host reads (batch_size is data-dependent in the
    # reference too; the per-batch capacities become static padding sizes).
    # All heavy data stays on device.
    b_ids_p = coords[:, 0].astype(jnp.int32)
    batch_size = int(jax.device_get(jnp.max(b_ids_p))) + 1
    cap_p = int(jax.device_get(jnp.max(jnp.bincount(b_ids_p, length=batch_size))))
    b_ids_l = laser_points[:, 0].astype(jnp.int32)
    cap_l = int(jax.device_get(jnp.max(jnp.bincount(b_ids_l, length=batch_size))))
    P_cap_pillar = _round_up(max(cap_p, 1), 128)
    P_cap_laser = _round_up(max(cap_l, 1), 128)

    batch_add = _forward_impl(
        coords, pillar_features, laser_range_in,
        jnp.asarray(rangenet_w, jnp.float32), laser_x, laser_y, laser_points,
        B=batch_size, P_cap_pillar=P_cap_pillar, P_cap_laser=P_cap_laser,
        nx=int(nx), ny=int(ny), nz=int(nz),
        y_range=tuple(float(v) for v in y_range),
        x_range=tuple(float(v) for v in x_range),
        res=float(res), compute_dtype=compute_dtype)

    out = dict(batch_dict)
    out['spatial_features'] = batch_add
    return out


# ----------------------------------------------------------------------------
# Demo
# ----------------------------------------------------------------------------
if __name__ == "__main__":
    key = jax.random.PRNGKey(0)
    keys = jax.random.split(key, 12)

    B = 2
    nx, ny, nz = 16, 16, 1
    num_pillar_features = 64
    n_pillars = 40                   # pillars per batch (unique voxel coords)
    H_r, W_r, C_in = 8, 16, 5        # range image
    n_pts = 48                       # laser points per batch
    y_range, x_range, res = (-2.0, 2.0), (0.0, 4.0), 0.25   # -> 16x16 BEV

    # voxel_coords rows: [batch, z, y, x]
    coords_list = []
    for b in range(B):
        perm = jax.random.permutation(keys[b], nx * ny)[:n_pillars]
        yv = (perm // nx).astype(jnp.int32)
        xv = (perm % nx).astype(jnp.int32)
        cb = jnp.stack([jnp.full_like(yv, b), jnp.zeros_like(yv), yv, xv], axis=1)
        coords_list.append(cb)
    voxel_coords = jnp.concatenate(coords_list, axis=0)                       # (80, 4)
    pillar_features = jax.random.normal(keys[2], (B * n_pillars,
                                                  num_pillar_features), jnp.float32)

    laser_range_in = jax.random.normal(keys[3], (B, H_r, W_r, C_in), jnp.float32)

    bcol = jnp.repeat(jnp.arange(B), n_pts).astype(jnp.float32)[:, None]
    xpix = jax.random.randint(keys[4], (B * n_pts, 1), 0, W_r).astype(jnp.float32)
    ypix = jax.random.randint(keys[5], (B * n_pts, 1), 0, H_r).astype(jnp.float32)
    laser_x = jnp.concatenate([bcol, xpix], axis=1)                           # (96, 2)
    laser_y = jnp.concatenate([bcol, ypix], axis=1)                           # (96, 2)

    px = jax.random.uniform(keys[6], (B * n_pts, 1), minval=0.05, maxval=3.95)
    py = jax.random.uniform(keys[7], (B * n_pts, 1), minval=-1.95, maxval=1.95)
    pz = jax.random.uniform(keys[8], (B * n_pts, 1), minval=-3.0, maxval=5.0)
    pint = jax.random.uniform(keys[9], (B * n_pts, 1))
    laser_points = jnp.concatenate([bcol, px, py, pz, pint], axis=1)          # (96, 5)

    rangenet_w = 0.1 * jax.random.normal(keys[10], (C_in, num_pillar_features),
                                         jnp.float32)

    batch_dict = {
        'pillar_features': pillar_features,
        'voxel_coords': voxel_coords,
        'laser_range_in': laser_range_in,
        'laser_x': laser_x,
        'laser_y': laser_y,
        'laser_points': laser_points,
    }

    out = pointpillar_scatter_range_image_forward(
        batch_dict, nx=nx, ny=ny, nz=nz, rangenet_w=rangenet_w,
        y_range=y_range, x_range=x_range, res=res)
    sf = out['spatial_features']
    jax.block_until_ready(sf)

    assert sf.shape == (B, 2 * num_pillar_features, ny, nx), sf.shape
    assert bool(jnp.all(jnp.isfinite(sf)))

    # Correctness spot-check of the pillar scatter half against a pure-JAX reference
    # (bf16 compute tolerance).
    flat_ref = (voxel_coords[:, 1] + voxel_coords[:, 2] * nx + voxel_coords[:, 3]).astype(jnp.int32)
    exp = jnp.zeros((B, nx * ny, num_pillar_features), jnp.float32)
    exp = exp.at[voxel_coords[:, 0].astype(jnp.int32), flat_ref].set(pillar_features)
    exp = jnp.transpose(exp, (0, 2, 1)).reshape(B, num_pillar_features, ny, nx)
    assert bool(jnp.allclose(sf[:, :num_pillar_features], exp, atol=2e-2, rtol=2e-2))

    print("KERNEL_OK")
</pallas_src>

<mosaic_0001>
module attributes {stable_mosaic.version = 11 : i64} {
  func.func private @main(%arg0: i32) attributes {dimension_semantics = [#tpu.dimension_semantics<core_parallel>], iteration_bounds = array<i64: 2>, tpu.core_type = #tpu.core_type<sc_scalar_subcore>, window_params = []} {
    return
  }
}

module attributes {stable_mosaic.version = 11 : i64} {
  func.func private @main(%arg0: i32) attributes {dimension_semantics = [#tpu.dimension_semantics<core_parallel>], iteration_bounds = array<i64: 2>, tpu.core_type = #tpu.core_type<sc_scalar_subcore>, window_params = []} {
    return
  }
}

module attributes {stable_mosaic.version = 11 : i64} {
  func.func @_conv1x1_relu_kernel(%arg0: i32, %arg1: i32, %arg2: memref<1x5x128xf32, #tpu.memory_space<vmem>>, %arg3: memref<64x5xf32, #tpu.memory_space<vmem>>, %arg4: memref<1x64x128xf32, #tpu.memory_space<vmem>>) attributes {dimension_semantics = [#tpu.dimension_semantics<parallel>, #tpu.dimension_semantics<parallel>], iteration_bounds = array<i64: 2, 1>, scalar_prefetch = 0 : i64, scratch_operands = 0 : i64, tpu.core_type = #tpu.core_type<tc>, window_params = [{transform_indices = @transform_0, window_bounds = array<i64: 1, 5, 128>}, {pipeline_mode = #tpu.pipeline_mode<synchronous>, transform_indices = @transform_1, window_bounds = array<i64: 64, 5>}, {transform_indices = @transform_2, window_bounds = array<i64: 1, 64, 128>}]} {
    %c0 = arith.constant 0 : index
    %c0_0 = arith.constant 0 : index
    %c0_1 = arith.constant 0 : index
    %0 = vector.load %arg2[%c0, %c0_0, %c0_1] : memref<1x5x128xf32, #tpu.memory_space<vmem>>, vector<1x5x128xf32>
    %1 = vector.shape_cast %0 : vector<1x5x128xf32> to vector<5x128xf32>
    %c0_2 = arith.constant 0 : index
    %c0_3 = arith.constant 0 : index
    %2 = vector.load %arg3[%c0_2, %c0_3] : memref<64x5xf32, #tpu.memory_space<vmem>>, vector<64x5xf32>
    %3 = vector.extract_strided_slice %2 {offsets = [0, 0], sizes = [64, 1], strides = [1, 1]} : vector<64x5xf32> to vector<64x1xf32>
    %4 = vector.extract_strided_slice %1 {offsets = [0, 0], sizes = [1, 128], strides = [1, 1]} : vector<5x128xf32> to vector<1x128xf32>
    %5 = vector.broadcast %3 : vector<64x1xf32> to vector<64x128xf32>
    %6 = vector.broadcast %4 : vector<1x128xf32> to vector<64x128xf32>
    %7 = arith.mulf %5, %6 : vector<64x128xf32>
    %8 = vector.extract_strided_slice %2 {offsets = [0, 1], sizes = [64, 1], strides = [1, 1]} : vector<64x5xf32> to vector<64x1xf32>
    %9 = vector.extract_strided_slice %1 {offsets = [1, 0], sizes = [1, 128], strides = [1, 1]} : vector<5x128xf32> to vector<1x128xf32>
    %10 = vector.broadcast %8 : vector<64x1xf32> to vector<64x128xf32>
    %11 = vector.broadcast %9 : vector<1x128xf32> to vector<64x128xf32>
    %12 = arith.mulf %10, %11 : vector<64x128xf32>
    %13 = arith.addf %7, %12 : vector<64x128xf32>
    %14 = vector.extract_strided_slice %2 {offsets = [0, 2], sizes = [64, 1], strides = [1, 1]} : vector<64x5xf32> to vector<64x1xf32>
    %15 = vector.extract_strided_slice %1 {offsets = [2, 0], sizes = [1, 128], strides = [1, 1]} : vector<5x128xf32> to vector<1x128xf32>
    %16 = vector.broadcast %14 : vector<64x1xf32> to vector<64x128xf32>
    %17 = vector.broadcast %15 : vector<1x128xf32> to vector<64x128xf32>
    %18 = arith.mulf %16, %17 : vector<64x128xf32>
    %19 = arith.addf %13, %18 : vector<64x128xf32>
    %20 = vector.extract_strided_slice %2 {offsets = [0, 3], sizes = [64, 1], strides = [1, 1]} : vector<64x5xf32> to vector<64x1xf32>
    %21 = vector.extract_strided_slice %1 {offsets = [3, 0], sizes = [1, 128], strides = [1, 1]} : vector<5x128xf32> to vector<1x128xf32>
    %22 = vector.broadcast %20 : vector<64x1xf32> to vector<64x128xf32>
    %23 = vector.broadcast %21 : vector<1x128xf32> to vector<64x128xf32>
    %24 = arith.mulf %22, %23 : vector<64x128xf32>
    %25 = arith.addf %19, %24 : vector<64x128xf32>
    %26 = vector.extract_strided_slice %2 {offsets = [0, 4], sizes = [64, 1], strides = [1, 1]} : vector<64x5xf32> to vector<64x1xf32>
    %27 = vector.extract_strided_slice %1 {offsets = [4, 0], sizes = [1, 128], strides = [1, 1]} : vector<5x128xf32> to vector<1x128xf32>
    %28 = vector.broadcast %26 : vector<64x1xf32> to vector<64x128xf32>
    %29 = vector.broadcast %27 : vector<1x128xf32> to vector<64x128xf32>
    %30 = arith.mulf %28, %29 : vector<64x128xf32>
    %31 = arith.addf %25, %30 : vector<64x128xf32>
    %cst = arith.constant 0.000000e+00 : f32
    %32 = vector.broadcast %cst : f32 to vector<64x128xf32>
    %33 = arith.maximumf %31, %32 : vector<64x128xf32>
    %c0_4 = arith.constant 0 : index
    %c0_5 = arith.constant 0 : index
    %c0_6 = arith.constant 0 : index
    %34 = vector.load %arg4[%c0_4, %c0_5, %c0_6] : memref<1x64x128xf32, #tpu.memory_space<vmem>>, vector<1x64x128xf32>
    %35 = vector.shape_cast %34 : vector<1x64x128xf32> to vector<64x128xf32>
    %36 = vector.shape_cast %33 : vector<64x128xf32> to vector<1x64x128xf32>
    tpu.vector_store %arg4[%c0_4, %c0_5, %c0_6], %36 {strides = array<i32>} : memref<1x64x128xf32, #tpu.memory_space<vmem>>, vector<1x64x128xf32>,
    return
  }
  func.func @transform_0(%arg0: i32, %arg1: i32) -> (i32, i32, i32) {
    %c0_i32 = arith.constant 0 : i32
    %c0_i32_0 = arith.constant 0 : i32
    return %arg0, %c0_i32, %arg1 : i32, i32, i32
  }
  func.func @transform_1(%arg0: i32, %arg1: i32) -> (i32, i32) {
    %c0_i32 = arith.constant 0 : i32
    %c0_i32_0 = arith.constant 0 : i32
    %c0_i32_1 = arith.constant 0 : i32
    return %c0_i32, %c0_i32_0 : i32, i32
  }
  func.func @transform_2(%arg0: i32, %arg1: i32) -> (i32, i32, i32) {
    %c0_i32 = arith.constant 0 : i32
    %c0_i32_0 = arith.constant 0 : i32
    return %arg0, %c0_i32, %arg1 : i32, i32, i32
  }
}

module attributes {stable_mosaic.version = 11 : i64} {
  func.func @_scatter_kernel(%arg0: i32, %arg1: i32, %arg2: i32, %arg3: memref<1x128x1xi32, #tpu.memory_space<vmem>>, %arg4: memref<1x64x128xf32, #tpu.memory_space<vmem>>, %arg5: memref<1x64x256xf32, #tpu.memory_space<vmem>>, %arg6: memref<64x256xf32, #tpu.memory_space<vmem>>) attributes {dimension_semantics = [#tpu.dimension_semantics<parallel>, #tpu.dimension_semantics<parallel>, #tpu.dimension_semantics<arbitrary>], iteration_bounds = array<i64: 2, 1, 1>, scalar_prefetch = 0 : i64, scratch_operands = 1 : i64, tpu.core_type = #tpu.core_type<tc>, window_params = [{transform_indices = @transform_0, window_bounds = array<i64: 1, 128, 1>}, {transform_indices = @transform_1, window_bounds = array<i64: 1, 64, 128>}, {transform_indices = @transform_2, window_bounds = array<i64: 1, 64, 256>}]} {
    %c0_i32 = arith.constant 0 : i32
    %0 = arith.cmpi eq, %arg2, %c0_i32 : i32
    %1 = arith.extui %0 : i1 to i32
    %c0_i32_0 = arith.constant 0 : i32
    %2 = arith.cmpi ne, %1, %c0_i32_0 : i32
    scf.if %2 {
      %cst_12 = arith.constant 0.000000e+00 : f32
      %24 = vector.broadcast %cst_12 : f32 to vector<64x256xf32>
      %c0_13 = arith.constant 0 : index
      %c0_14 = arith.constant 0 : index
      %25 = vector.load %arg6[%c0_13, %c0_14] : memref<64x256xf32, #tpu.memory_space<vmem>>, vector<64x256xf32>
      tpu.vector_store %arg6[%c0_13, %c0_14], %24 {strides = array<i32>} : memref<64x256xf32, #tpu.memory_space<vmem>>, vector<64x256xf32>,
    } else {
    }
    %c0 = arith.constant 0 : index
    %c0_1 = arith.constant 0 : index
    %c0_2 = arith.constant 0 : index
    %3 = vector.load %arg3[%c0, %c0_1, %c0_2] : memref<1x128x1xi32, #tpu.memory_space<vmem>>, vector<1x128x1xi32>
    %4 = vector.shape_cast %3 : vector<1x128x1xi32> to vector<128x1xi32>
    %5 = tpu.iota {dimensions = array<i32: 1>} : vector<128x256xi32>
    %c256_i32 = arith.constant 256 : i32
    %6 = arith.muli %arg1, %c256_i32 : i32
    %7 = vector.broadcast %6 : i32 to vector<128x1xi32>
    %8 = arith.subi %4, %7 : vector<128x1xi32>
    %9 = vector.broadcast %8 : vector<128x1xi32> to vector<128x256xi32>
    %10 = arith.cmpi eq, %9, %5 : vector<128x256xi32>
    %11 = arith.extui %10 : vector<128x256xi1> to vector<128x256xi32>
    %12 = arith.sitofp %11 : vector<128x256xi32> to vector<128x256xf32>
    %13 = arith.truncf %12 : vector<128x256xf32> to vector<128x256xbf16>
    %c0_3 = arith.constant 0 : index
    %c0_4 = arith.constant 0 : index
    %c0_5 = arith.constant 0 : index
    %14 = vector.load %arg4[%c0_3, %c0_4, %c0_5] : memref<1x64x128xf32, #tpu.memory_space<vmem>>, vector<1x64x128xf32>
    %15 = vector.shape_cast %14 : vector<1x64x128xf32> to vector<64x128xf32>
    %16 = arith.truncf %15 : vector<64x128xf32> to vector<64x128xbf16>
    %c0_6 = arith.constant 0 : index
    %c0_7 = arith.constant 0 : index
    %17 = vector.load %arg6[%c0_6, %c0_7] : memref<64x256xf32, #tpu.memory_space<vmem>>, vector<64x256xf32>
    %cst = arith.constant dense<0.000000e+00> : vector<64x256xf32>
    %18 = tpu.matmul %16, %13, %cst {dimension_numbers = #tpu.dot_dimension_numbers<[1], [0], [0], [1], [0, 0, 1, 1], [], []>} : vector<64x128xbf16>, vector<128x256xbf16>, vector<64x256xf32> -> vector<64x256xf32>
    %19 = arith.addf %17, %18 : vector<64x256xf32>
    %c0_8 = arith.constant 0 : index
    %c0_9 = arith.constant 0 : index
    %20 = vector.load %arg6[%c0_8, %c0_9] : memref<64x256xf32, #tpu.memory_space<vmem>>, vector<64x256xf32>
    tpu.vector_store %arg6[%c0_8, %c0_9], %19 {strides = array<i32>} : memref<64x256xf32, #tpu.memory_space<vmem>>, vector<64x256xf32>,
    %c0_i32_10 = arith.constant 0 : i32
    %21 = arith.cmpi eq, %arg2, %c0_i32_10 : i32
    %22 = arith.extui %21 : i1 to i32
    %c0_i32_11 = arith.constant 0 : i32
    %23 = arith.cmpi ne, %22, %c0_i32_11 : i32
    scf.if %23 {
      %c0_12 = arith.constant 0 : index
      %c0_13 = arith.constant 0 : index
      %24 = vector.load %arg6[%c0_12, %c0_13] : memref<64x256xf32, #tpu.memory_space<vmem>>, vector<64x256xf32>
      %c0_14 = arith.constant 0 : index
      %c0_15 = arith.constant 0 : index
      %c0_16 = arith.constant 0 : index
      %25 = vector.load %arg5[%c0_14, %c0_15, %c0_16] : memref<1x64x256xf32, #tpu.memory_space<vmem>>, vector<1x64x256xf32>
      %26 = vector.shape_cast %25 : vector<1x64x256xf32> to vector<64x256xf32>
      %27 = vector.shape_cast %24 : vector<64x256xf32> to vector<1x64x256xf32>
      tpu.vector_store %arg5[%c0_14, %c0_15, %c0_16], %27 {strides = array<i32>} : memref<1x64x256xf32, #tpu.memory_space<vmem>>, vector<1x64x256xf32>,
    } else {
    }
    return
  }
  func.func @transform_0(%arg0: i32, %arg1: i32, %arg2: i32) -> (i32, i32, i32) {
    %c0_i32 = arith.constant 0 : i32
    %c0_i32_0 = arith.constant 0 : i32
    return %arg0, %arg2, %c0_i32 : i32, i32, i32
  }
  func.func @transform_1(%arg0: i32, %arg1: i32, %arg2: i32) -> (i32, i32, i32) {
    %c0_i32 = arith.constant 0 : i32
    %c0_i32_0 = arith.constant 0 : i32
    return %arg0, %c0_i32, %arg2 : i32, i32, i32
  }
  func.func @transform_2(%arg0: i32, %arg1: i32, %arg2: i32) -> (i32, i32, i32) {
    %c0_i32 = arith.constant 0 : i32
    %c0_i32_0 = arith.constant 0 : i32
    return %arg0, %c0_i32, %arg1 : i32, i32, i32
  }
}

</mosaic_0001>

<bundles_post_ra>
// kernel: _forward_impl.4
= control target key start
LH: loop header
LB: loop body
LE: loop exit
PB: predicated region body
PF: predicated region fallthrough
CT: control target
= control target key end

     0   :  { %s631_s9 = smov 0   ;;  %s633_s10 = smov 0   ;;  %s801_s0 = inlined_call_operand.vmem [shape: f32[2,5,128], index: 0, kind: input, shape index: {}]   ;;  %s802_s1 = inlined_call_operand.vmem [shape: f32[64,5], index: 1, kind: input, shape index: {}]   ;;  %s803_s2 = inlined_call_operand.vmem [shape: f32[2,64,128], index: 2, kind: output, shape index: {}]  }
   0x1   :  { %s635_s11 = smov 0  }
   0x2 LB: > { %s24_s12 = sadd.s32 1, %s605_s10  ;;  %p541_p0 = scmp.ge.s32.totalorder %s609_s11, 1  ;;  %s609_s11 = sphi %s635_s11, %s12_s11   ;;  %s605_s10 = sphi %s633_s10, %s805_s10   ;;  %s601_s9 = sphi %s631_s9, %s804_s9  }
   0x3   : > { %p26_p1 = scmp.ge.s32.totalorder %s24_s12, 2  ;;  %p130_p2 = scmp.lt.s32.totalorder %s609_s11, 3 }
   0x5   : > { %s807_s12 = smov (%p26_p1, %s24_s12), 0  ;;  %p131_p3 = pnand %p541_p0, %p130_p2 }
   0x6   : > { %v175_v0 = vld [vmem:[%s802_s1 + $0x10] sm:$0xff] (!%p131_p3)  ;;  %v173_v1 = vld [vmem:[%s802_s1] sm:$0xff] (!%p131_p3)  ;;  %v611_v2 = vmov (!%p131_p3), 0   ;;  %v176_v3 = vld [vmem:[%s802_s1 + $0x18] sm:$0xff] (!%p131_p3)  ;;  %v612_v9 = vmov (!%p131_p3), 1   ;;  %v613_v10 = vmov (!%p131_p3), 2   ;;  %v221_v35 = vlaneseq (!%p131_p3) }
   0x7   : > { %134 = sbr.rel (%p131_p3) target bundleno = 231 (0xe7), region = 28  ;;  %578 = vset.pattern.permute.xlu1 (!%p131_p3), %v611_v2  ;;  %577 = vset.pattern.permute.xlu0 (!%p131_p3), %v611_v2  ;;  %v174_v4 = vld [vmem:[%s802_s1 + $0x8] sm:$0xff] (!%p131_p3)  ;;  %v177_v6 = vld [vmem:[%s802_s1 + $0x20] sm:$0xff] (!%p131_p3)  ;;  %v180_v7 = vld [vmem:[%s802_s1 + $0x38] sm:$0xff] (!%p131_p3)  ;;  %v614_v11 = vmov (!%p131_p3), 3   ;;  %v615_v12 = vmov (!%p131_p3), 4  }
   0x8   : > { %193 = vperm.xlu1 (!%p131_p3), %578, %v175_v0   ;;  %183 = vperm.xlu0 (!%p131_p3), %577, %v173_v1   ;;  %v178_v5 = vld [vmem:[%s802_s1 + $0x28] sm:$0xff] (!%p131_p3)  ;;  %v179_v8 = vld [vmem:[%s802_s1 + $0x30] sm:$0xff] (!%p131_p3)  ;;  %p157_p4 = scmp.lt.s32.totalorder (!%p131_p3), %s601_s9, 1  ;;  %v222_v37 = vshrl.u32 (!%p131_p3), %v221_v35, 7 }
   0xa   : > { %v267_v39 = vsub.s32 (!%p131_p3), 1, %v222_v37  ;;  %v223_v41 = vsub.s32 (!%p131_p3), 0, %v222_v37  ;;  %v319_v42 = vsub.s32 (!%p131_p3), 2, %v222_v37  ;;  %v371_v48 = vsub.s32 (!%p131_p3), 3, %v222_v37 }
   0xb   : > { %v423_v53 = vsub.s32 (!%p131_p3), 4, %v222_v37 }
   0xc   : > { %198 = vperm.xlu1 (!%p131_p3), %578, %v176_v3   ;;  %188 = vperm.xlu0 (!%p131_p3), %577, %v174_v4  }
   0xe   : > { %s809_s9 = smov (!%p157_p4, %s601_s9), 1 }
   0xf   : > { %s542_s29 = sshll.u32 %s809_s9, 3  ;;  %s547_s5 = sshll.u32 %s809_s9, 6 }
  0x10   : > { %208 = vperm.xlu1 %578, %v178_v5   ;;  %203 = vperm.xlu0 %577, %v177_v6   ;;  %s163_s4 = scalar_lea.vmem %s801_s0, %s542_s29  ;;  %s745_s8 = scalar_lea.vmem %s803_s2, %s547_s5 }
  0x11   : > { %v172_v44 = vld [vmem:[%s163_s4] sm:$0x1f] }
  0x12   : > { %v709_v45 = vrot.slane %v172_v44, %v267_v39  ;;  %v711_v46 = vrot.slane %v172_v44, %v223_v41  ;;  %v713_v47 = vrot.slane %v172_v44, %v319_v42  ;;  %v720_v55 = vrot.slane %v172_v44, %v371_v48 }
  0x13   : > { %v726_v61 = vrot.slane %v172_v44, %v423_v53 }
  0x14   : > { %218 = vperm.xlu1 %578, %v180_v7   ;;  %213 = vperm.xlu0 %577, %v179_v8  }
  0x18   : > { %580 = vset.pattern.permute.xlu1 %v612_v9  ;;  %579 = vset.pattern.permute.xlu0 %v612_v9 }
  0x19   : > { %238 = vperm.xlu1 %580, %v174_v4   ;;  %234 = vperm.xlu0 %579, %v173_v1  }
  0x1d   : > { %242 = vperm.xlu1 %580, %v175_v0   ;;  %246 = vperm.xlu0 %579, %v176_v3  }
  0x21   : > { %250 = vperm.xlu1 %580, %v177_v6   ;;  %254 = vperm.xlu0 %579, %v178_v5  }
  0x25   : > { %258 = vperm.xlu1 %580, %v179_v8   ;;  %262 = vperm.xlu0 %579, %v180_v7  }
  0x29   : > { %581 = vset.pattern.permute.xlu1 %v613_v10  ;;  %582 = vset.pattern.permute.xlu0 %v613_v10 }
  0x2a   : > { %286 = vperm.xlu1 %581, %v173_v1   ;;  %290 = vperm.xlu0 %582, %v174_v4  }
  0x2e   : > { %294 = vperm.xlu1 %581, %v175_v0   ;;  %302 = vperm.xlu0 %582, %v177_v6  }
  0x32   : > { %298 = vperm.xlu1 %581, %v176_v3   ;;  %310 = vperm.xlu0 %582, %v179_v8  }
  0x36   : > { %306 = vperm.xlu1 %581, %v178_v5   ;;  %583 = vset.pattern.permute.xlu0 %v614_v11 }
  0x37   : > { %338 = vperm.xlu0 %583, %v173_v1  }
  0x3a   : > { %314 = vperm.xlu1 %581, %v180_v7  }
  0x3b   : > { %350 = vperm.xlu0 %583, %v176_v3  }
  0x3e   : > { %584 = vset.pattern.permute.xlu1 %v614_v11 }
  0x3f   : > { %342 = vperm.xlu1 %584, %v174_v4   ;;  %358 = vperm.xlu0 %583, %v178_v5  }
  0x43   : > { %346 = vperm.xlu1 %584, %v175_v0   ;;  %366 = vperm.xlu0 %583, %v180_v7  }
  0x47   : > { %354 = vperm.xlu1 %584, %v177_v6   ;;  %586 = vset.pattern.permute.xlu0 %v615_v12 }
  0x48   : > { %394 = vperm.xlu0 %586, %v174_v4  }
  0x4b   : > { %362 = vperm.xlu1 %584, %v179_v8  }
  0x4c   : > { %406 = vperm.xlu0 %586, %v177_v6  }
  0x4f   : > { %585 = vset.pattern.permute.xlu1 %v615_v12 }
  0x50   : > { %390 = vperm.xlu1 %585, %v173_v1   ;;  %414 = vperm.xlu0 %586, %v179_v8  }
  0x54   : > { %398 = vperm.xlu1 %585, %v175_v0  }
  0x58   : > { %402 = vperm.xlu1 %585, %v176_v3  }
  0x5c   : > { %410 = vperm.xlu1 %585, %v178_v5  }
  0x60   : > { %418 = vperm.xlu1 %585, %v180_v7  }
  0x87   : > { %v675_v13 = vpop.permute.xlu1 %193  ;;  %v184_v14 = vpop.permute.xlu0 %183 }
  0x88   : > { %v225_v2 = vmul.f32 %v711_v46, %v184_v14  ;;  %v227_v35 = vmul.f32 %v711_v46, %v675_v13 }
  0x8b   : > { %v677_v15 = vpop.permute.xlu1 %198  ;;  %v189_v16 = vpop.permute.xlu0 %188 }
  0x8c   : > { %v226_v51 = vmul.f32 %v711_v46, %v189_v16 }
  0x8f   : > { %v679_v17 = vpop.permute.xlu1 %208  ;;  %v204_v18 = vpop.permute.xlu0 %203 }
  0x90   : > { %v229_v62 = vmul.f32 %v711_v46, %v204_v18 }
  0x93   : > { %v681_v19 = vpop.permute.xlu1 %218  ;;  %v214_v20 = vpop.permute.xlu0 %213 }
  0x94   : > { %v231_v10 = vmul.f32 %v711_v46, %v214_v20 }
  0x98   : > { %v239_v21 = vpop.permute.xlu1 %238  ;;  %v235_v22 = vpop.permute.xlu0 %234 }
  0x99   : > { %v270_v52 = vmul.f32 %v709_v45, %v239_v21  ;;  %v269_v3 = vmul.f32 %v709_v45, %v235_v22 }
  0x9b   : > { %v278_v58 = vadd.f32 %v270_v52, %v226_v51  ;;  %v277_v21 = vadd.f32 %v269_v3, %v225_v2 }
  0x9c   : > { %v683_v23 = vpop.permute.xlu1 %242  ;;  %v685_v24 = vpop.permute.xlu0 %246 }
  0x9d   : > { %v271_v22 = vmul.f32 %v709_v45, %v683_v23  ;;  %v272_v42 = vmul.f32 %v709_v45, %v685_v24 }
  0x9f   : > { %v279_v41 = vadd.f32 %v271_v22, %v227_v35 }
  0xa0   : > { %v251_v25 = vpop.permute.xlu1 %250  ;;  %v687_v26 = vpop.permute.xlu0 %254 }
  0xa1   : > { %v273_v59 = vmul.f32 %v709_v45, %v251_v25 }
  0xa3   : > { %v281_v6 = vadd.f32 %v273_v59, %v229_v62  ;;  %v274_v62 = vmul.f32 %v709_v45, %v687_v26 }
  0xa4   : > { %v259_v27 = vpop.permute.xlu1 %258  ;;  %v689_v28 = vpop.permute.xlu0 %262 }
  0xa5   : > { %v275_v4 = vmul.f32 %v709_v45, %v259_v27 }
  0xa7   : > { %v283_v25 = vadd.f32 %v275_v4, %v231_v10 }
  0xa9   : > { %v287_v29 = vpop.permute.xlu1 %286  ;;  %v291_v30 = vpop.permute.xlu0 %290 }
  0xaa   : > { %v322_v54 = vmul.f32 %v713_v47, %v291_v30  ;;  %v321_v11 = vmul.f32 %v713_v47, %v287_v29 }
  0xac   : > { %v330_v63 = vadd.f32 %v322_v54, %v278_v58  ;;  %v329_v23 = vadd.f32 %v321_v11, %v277_v21  ;;  %v232_v11 = vmul.f32 %v711_v46, %v681_v19 }
  0xad   : > { %v692_v31 = vpop.permute.xlu1 %294  ;;  %v303_v32 = vpop.permute.xlu0 %302 }
  0xae   : > { %v325_v0 = vmul.f32 %v713_v47, %v303_v32  ;;  %v323_v37 = vmul.f32 %v713_v47, %v692_v31  ;;  %v228_v31 = vmul.f32 %v711_v46, %v677_v15 }
  0xb0   : > { %v333_v12 = vadd.f32 %v325_v0, %v281_v6  ;;  %v331_v58 = vadd.f32 %v323_v37, %v279_v41 }
  0xb1   : > { %v697_v33 = vpop.permute.xlu1 %298  ;;  %v311_v34 = vpop.permute.xlu0 %310 }
  0xb2   : > { %v327_v16 = vmul.f32 %v713_v47, %v311_v34  ;;  %v324_v59 = vmul.f32 %v713_v47, %v697_v33  ;;  %v230_v33 = vmul.f32 %v711_v46, %v679_v17 }
  0xb4   : > { %v282_v6 = vadd.f32 %v274_v62, %v230_v33 }
  0xb5   : > { %v700_v36 = vpop.permute.xlu1 %306 }
  0xb6   : > { %v339_v38 = vpop.permute.xlu0 %338 }
  0xb7   : > { %v373_v27 = vmul.f32 %v720_v55, %v339_v38  ;;  %v335_v38 = vadd.f32 %v327_v16, %v283_v25 }
  0xb9   : > { %v705_v40 = vpop.permute.xlu1 %314  ;;  %v381_v44 = vadd.f32 %v373_v27, %v329_v23 }
  0xba   : > { %v707_v43 = vpop.permute.xlu0 %350 }
  0xbe   : > { %v343_v49 = vpop.permute.xlu1 %342  ;;  %v715_v50 = vpop.permute.xlu0 %358 }
  0xbf   : > { %v374_v60 = vmul.f32 %v720_v55, %v343_v49 }
  0xc1   : > { %v382_v7 = vadd.f32 %v374_v60, %v330_v63  ;;  %v280_v60 = vadd.f32 %v272_v42, %v228_v31  ;;  %v376_v63 = vmul.f32 %v720_v55, %v707_v43  ;;  %v276_v43 = vmul.f32 %v709_v45, %v689_v28 }
  0xc2   : > { %v347_v56 = vpop.permute.xlu1 %346  ;;  %v722_v57 = vpop.permute.xlu0 %366 }
  0xc3   : > { %v375_v48 = vmul.f32 %v720_v55, %v347_v56  ;;  %v332_v4 = vadd.f32 %v324_v59, %v280_v60  ;;  %v284_v28 = vadd.f32 %v276_v43, %v232_v11 }
  0xc6   : > { %v355_v1 = vpop.permute.xlu1 %354 }
  0xc7   : > { %v395_v5 = vpop.permute.xlu0 %394  ;;  %v377_v8 = vmul.f32 %v720_v55, %v355_v1  ;;  %v383_v1 = vadd.f32 %v375_v48, %v331_v58 }
  0xc8   : > { %v426_v9 = vmul.f32 %v726_v61, %v395_v5  ;;  %v326_v5 = vmul.f32 %v713_v47, %v700_v36 }
  0xc9   : > { %v385_v29 = vadd.f32 %v377_v8, %v333_v12  ;;  %v384_v8 = vadd.f32 %v376_v63, %v332_v4  ;;  %v328_v12 = vmul.f32 %v713_v47, %v705_v40 }
  0xca   : > { %v434_v14 = vadd.f32 %v426_v9, %v382_v7  ;;  %v363_v18 = vpop.permute.xlu1 %362  ;;  %v378_v9 = vmul.f32 %v720_v55, %v715_v50  ;;  %v334_v36 = vadd.f32 %v326_v5, %v282_v6  ;;  %v380_v50 = vmul.f32 %v720_v55, %v722_v57 }
  0xcb   : > { %v407_v20 = vpop.permute.xlu0 %406  ;;  %v379_v32 = vmul.f32 %v720_v55, %v363_v18  ;;  %v336_v22 = vadd.f32 %v328_v12, %v284_v28 }
  0xcc   : > { %v442_v30 = vmax.f32 %v434_v14, 0.0  ;;  %v429_v34 = vmul.f32 %v726_v61, %v407_v20  ;;  %v386_v14 = vadd.f32 %v378_v9, %v334_v36 }
  0xcd   : > { %v387_v52 = vadd.f32 %v379_v32, %v335_v38  ;;  %v388_v25 = vadd.f32 %v380_v50, %v336_v22 }
  0xce   : > { %450 = vst [vmem:[%s745_s8 + $0x8] sm:$0xff] %v442_v30  ;;  %v437_v39 = vadd.f32 %v429_v34, %v385_v29 }
  0xcf   : > { %v391_v49 = vpop.permute.xlu1 %390  ;;  %v415_v51 = vpop.permute.xlu0 %414 }
  0xd0   : > { %v445_v53 = vmax.f32 %v437_v39, 0.0  ;;  %v425_v13 = vmul.f32 %v726_v61, %v391_v49  ;;  %v431_v54 = vmul.f32 %v726_v61, %v415_v51 }
  0xd2   : > { %453 = vst [vmem:[%s745_s8 + $0x20] sm:$0xff] %v445_v53  ;;  %v433_v24 = vadd.f32 %v425_v13, %v381_v44  ;;  %v439_v56 = vadd.f32 %v431_v54, %v387_v52 }
  0xd3   : > { %v399_v0 = vpop.permute.xlu1 %398 }
  0xd4   : > { %v441_v2 = vmax.f32 %v433_v24, 0.0  ;;  %v447_v15 = vmax.f32 %v439_v56, 0.0  ;;  %v427_v3 = vmul.f32 %v726_v61, %v399_v0 }
  0xd6   : > { %449 = vst [vmem:[%s745_s8] sm:$0xff] %v441_v2  ;;  %455 = vst [vmem:[%s745_s8 + $0x30] sm:$0xff] %v447_v15  ;;  %v435_v26 = vadd.f32 %v427_v3, %v383_v1 }
  0xd7   : > { %v403_v7 = vpop.permute.xlu1 %402 }
  0xd8   : > { %v443_v10 = vmax.f32 %v435_v26, 0.0  ;;  %v428_v17 = vmul.f32 %v726_v61, %v403_v7 }
  0xda   : > { %451 = vst [vmem:[%s745_s8 + $0x10] sm:$0xff] %v443_v10  ;;  %v436_v16 = vadd.f32 %v428_v17, %v384_v8 }
  0xdb   : > { %v411_v45 = vpop.permute.xlu1 %410 }
  0xdc   : > { %v444_v18 = vmax.f32 %v436_v16, 0.0  ;;  %v430_v21 = vmul.f32 %v726_v61, %v411_v45 }
  0xde   : > { %452 = vst [vmem:[%s745_s8 + $0x18] sm:$0xff] %v444_v18  ;;  %v438_v19 = vadd.f32 %v430_v21, %v386_v14 }
  0xdf   : > { %v419_v46 = vpop.permute.xlu1 %418 }
  0xe0   : > { %v446_v27 = vmax.f32 %v438_v19, 0.0  ;;  %v432_v40 = vmul.f32 %v726_v61, %v419_v46 }
  0xe2   : > { %454 = vst [vmem:[%s745_s8 + $0x28] sm:$0xff] %v446_v27  ;;  %v440_v47 = vadd.f32 %v432_v40, %v388_v25 }
  0xe4   : > { %v448_v20 = vmax.f32 %v440_v47, 0.0 }
  0xe6   : > { %456 = vst [vmem:[%s745_s8 + $0x38] sm:$0xff] %v448_v20 }
  0xe7 PF: > { %s12_s11 = sadd.s32 1, %s609_s11   ;;  %s804_s9 = smov %s605_s10 }
  0xe8   : > { %p9_p5 = scmp.ge.s32.totalorder %s12_s11, 4   ;;  %s805_s10 = smov %s807_s12 }
  0xea   :  { %11 = sbr.rel (!%p9_p5) target bundleno = 2 (0x2), region = 58 }

// kernel: _forward_impl.5
= control target key start
LH: loop header
LB: loop body
LE: loop exit
PB: predicated region body
PF: predicated region fallthrough
CT: control target
= control target key end

     0   :  { %s880_s9 = smov 0   ;;  %s882_s10 = smov 0   ;;  %s1017_s0 = inlined_call_operand.vmem [shape: s32[2,128,1], index: 0, kind: input, shape index: {}]   ;;  %s1018_s1 = inlined_call_operand.vmem [shape: f32[2,64,128], index: 1, kind: input, shape index: {}]   ;;  %s1019_s2 = inlined_call_operand.vmem [shape: f32[2,64,256], index: 2, kind: output, shape index: {}]  }
   0x1   :  { %s884_s11 = smov 0  }
   0x2 LB: > { %s31_s12 = sadd.s32 1, %s857_s10  ;;  %p719_p0 = scmp.ge.s32.totalorder %s861_s11, 1  ;;  %s861_s11 = sphi %s884_s11, %s12_s11   ;;  %s857_s10 = sphi %s882_s10, %s1021_s10   ;;  %s853_s9 = sphi %s880_s9, %s1020_s9  }
   0x3   : > { %p33_p1 = scmp.ge.s32.totalorder %s31_s12, 2  ;;  %p155_p2 = scmp.lt.s32.totalorder %s861_s11, 3 }
   0x5   : > { %s1023_s12 = smov (%p33_p1, %s31_s12), 0  ;;  %p156_p3 = pnand %p719_p0, %p155_p2 }
   0x6   : > { %p194_p4 = scmp.lt.s32.totalorder (!%p156_p3), %s853_s9, 1  ;;  %v863_v0 = vmov (!%p156_p3), 0   ;;  %v258_v17 = vlaneseq (!%p156_p3)  ;;  %v864_v26 = vmov (!%p156_p3), 1.0|1.0  }
   0x7   : > { %159 = sbr.rel (%p156_p3) target bundleno = 408 (0x198), region = 28  ;;  %838 = vset.pattern.permute.xlu1 (!%p156_p3), %v863_v0  ;;  %837 = vset.pattern.permute.xlu0 (!%p156_p3), %v863_v0 }
   0x8   : > { %499 = vmatprep.mubr.bf16.mxu0 (!%p156_p3), %v863_v0  ;;  %519 = vmatprep.mubr.bf16.mxu1 (!%p156_p3), %v863_v0  ;;  %v910_v18 = vand.u32 (!%p156_p3), 127, %v258_v17 }
   0xa   : > { %v913_v21 = vadd.s32 (!%p156_p3), 128, %v910_v18 }
   0xe   : > { %s1025_s9 = smov (!%p194_p4, %s853_s9), 1 }
   0xf   : > { %s792_s13 = sshll.u32 %s1025_s9, 7  ;;  %s793_s17 = sshll.u32 %s1025_s9, 6 }
  0x10   : > { %s201_s16 = scalar_lea.vmem %s1017_s0, %s792_s13  ;;  %s210_s20 = scalar_lea.vmem %s1018_s1, %s793_s17 }
  0x11   : > { %v244_v1 = vld [vmem:[%s201_s16 + $0x10] sm:$0xff]  ;;  %v242_v2 = vld [vmem:[%s201_s16] sm:$0xff]  ;;  %v245_v3 = vld [vmem:[%s201_s16 + $0x18] sm:$0xff]  ;;  %s990_s23 = scalar_lea.vmem %s1019_s2, %s792_s13 }
  0x12   : > { %286 = vperm.xlu1 %838, %v244_v1   ;;  %280 = vperm.xlu0 %837, %v242_v2   ;;  %v243_v4 = vld [vmem:[%s201_s16 + $0x8] sm:$0xff]  ;;  %v246_v6 = vld [vmem:[%s201_s16 + $0x20] sm:$0xff]  ;;  %v249_v7 = vld [vmem:[%s201_s16 + $0x38] sm:$0xff] }
  0x13   : > { %v247_v5 = vld [vmem:[%s201_s16 + $0x28] sm:$0xff]  ;;  %v248_v8 = vld [vmem:[%s201_s16 + $0x30] sm:$0xff]  ;;  %v250_v10 = vld [vmem:[%s201_s16 + $0x40] sm:$0xff] }
  0x14   : > { %v251_v9 = vld [vmem:[%s201_s16 + $0x48] sm:$0xff]  ;;  %v253_v11 = vld [vmem:[%s201_s16 + $0x58] sm:$0xff]  ;;  %v252_v12 = vld [vmem:[%s201_s16 + $0x50] sm:$0xff] }
  0x15   : > { %v255_v13 = vld [vmem:[%s201_s16 + $0x68] sm:$0xff]  ;;  %v254_v14 = vld [vmem:[%s201_s16 + $0x60] sm:$0xff]  ;;  %v257_v15 = vld [vmem:[%s201_s16 + $0x78] sm:$0xff] }
  0x16   : > { %289 = vperm.xlu1 %838, %v245_v3   ;;  %283 = vperm.xlu0 %837, %v243_v4   ;;  %v256_v16 = vld [vmem:[%s201_s16 + $0x70] sm:$0xff]  ;;  %v439_v37 = vld [vmem:[%s210_s20] sm:$0xff]  ;;  %v440_v38 = vld [vmem:[%s210_s20 + $0x8] sm:$0xff] }
  0x17   : > { %v443_v39 = vld [vmem:[%s210_s20 + $0x20] sm:$0xff]  ;;  %v444_v40 = vld [vmem:[%s210_s20 + $0x28] sm:$0xff]  ;;  %v447_v41 = vpack.c.bf16 %v440_v38, %v439_v37  ;;  %v441_v43 = vld [vmem:[%s210_s20 + $0x10] sm:$0xff] }
  0x18   : > { %v449_v42 = vpack.c.bf16 %v444_v40, %v443_v39  ;;  %v442_v44 = vld [vmem:[%s210_s20 + $0x18] sm:$0xff]  ;;  %v445_v45 = vld [vmem:[%s210_s20 + $0x30] sm:$0xff] }
  0x19   : > { %v446_v46 = vld [vmem:[%s210_s20 + $0x38] sm:$0xff]  ;;  %v448_v47 = vpack.c.bf16 %v442_v44, %v441_v43 }
  0x1a   : > { %295 = vperm.xlu1 %838, %v247_v5   ;;  %292 = vperm.xlu0 %837, %v246_v6   ;;  %v450_v48 = vpack.c.bf16 %v446_v46, %v445_v45 }
  0x1e   : > { %301 = vperm.xlu1 %838, %v249_v7   ;;  %298 = vperm.xlu0 %837, %v248_v8  }
  0x22   : > { %307 = vperm.xlu1 %838, %v251_v9   ;;  %304 = vperm.xlu0 %837, %v250_v10  }
  0x26   : > { %313 = vperm.xlu1 %838, %v253_v11   ;;  %310 = vperm.xlu0 %837, %v252_v12  }
  0x2a   : > { %319 = vperm.xlu1 %838, %v255_v13   ;;  %316 = vperm.xlu0 %837, %v254_v14  }
  0x2e   : > { %325 = vperm.xlu1 %838, %v257_v15   ;;  %322 = vperm.xlu0 %837, %v256_v16  }
  0x91   : > { %v287_v19 = vpop.permute.xlu1 %286  ;;  %v281_v20 = vpop.permute.xlu0 %280 }
  0x92   : > { %vm332_vm2 = vcmp.eq.s32.totalorder %v287_v19, %v913_v21  ;;  %vm328_vm4 = vcmp.eq.s32.totalorder %v281_v20, %v913_v21  ;;  %vm327_vm5 = vcmp.eq.s32.totalorder %v281_v20, %v910_v18  ;;  %vm331_vm8 = vcmp.eq.s32.totalorder %v287_v19, %v910_v18 }
  0x95   : > { %v290_v22 = vpop.permute.xlu1 %289  ;;  %v284_v23 = vpop.permute.xlu0 %283 }
  0x96   : > { %vm330_vm0 = vcmp.eq.s32.totalorder %v284_v23, %v913_v21  ;;  %vm329_vm1 = vcmp.eq.s32.totalorder %v284_v23, %v910_v18  ;;  %vm334_vm3 = vcmp.eq.s32.totalorder %v290_v22, %v913_v21  ;;  %vm333_vm9 = vcmp.eq.s32.totalorder %v290_v22, %v910_v18 }
  0x97   : > { %vm758_vm6 = vmpackc.low %vm330_vm0, %vm328_vm4 }
  0x98   : > { %759 = vmatprep.subr.msk.bf16.mxu0 %vm758_vm6, %v864_v26  ;;  %795 = vmatprep.subr.msk.bf16.mxu1 %vm758_vm6, %v864_v26  ;;  %vm760_vm7 = vmpackc.low %vm329_vm1, %vm327_vm5 }
  0x99   : > { %v296_v24 = vpop.permute.xlu1 %295  ;;  %v293_v25 = vpop.permute.xlu0 %292  ;;  %vm762_vm10 = vmpackc.low %vm334_vm3, %vm332_vm2  ;;  %761 = vmatpush1.bf16.msk.msra.mxu0 %vm760_vm7, %v864_v26  ;;  %803 = vmatpush1.bf16.msk.msra.mxu1 %vm760_vm7, %v864_v26 }
  0x9a   : > { %vm338_vm11 = vcmp.eq.s32.totalorder %v296_v24, %v913_v21  ;;  %vm336_vm12 = vcmp.eq.s32.totalorder %v293_v25, %v913_v21  ;;  %763 = vmatprep.subr.msk.bf16.mxu0 %vm762_vm10, %v864_v26  ;;  %796 = vmatprep.subr.msk.bf16.mxu1 %vm762_vm10, %v864_v26  ;;  %vm764_vm13 = vmpackc.low %vm333_vm9, %vm331_vm8  ;;  %vm337_vm14 = vcmp.eq.s32.totalorder %v296_v24, %v910_v18 }
  0x9b   : > { %vm335_vm15 = vcmp.eq.s32.totalorder %v293_v25, %v910_v18  ;;  %vm766_vm0 = vmpackc.low %vm338_vm11, %vm336_vm12 }
  0x9c   : > { %vm768_vm3 = vmpackc.low %vm337_vm14, %vm335_vm15 }
  0x9d   : > { %v302_v27 = vpop.permute.xlu1 %301  ;;  %v299_v28 = vpop.permute.xlu0 %298  ;;  %765 = vmatpush1.bf16.msk.msra.mxu0 %vm764_vm13, %v864_v26  ;;  %804 = vmatpush1.bf16.msk.msra.mxu1 %vm764_vm13, %v864_v26 }
  0x9e   : > { %vm342_vm1 = vcmp.eq.s32.totalorder %v302_v27, %v913_v21  ;;  %vm340_vm2 = vcmp.eq.s32.totalorder %v299_v28, %v913_v21  ;;  %767 = vmatprep.subr.msk.bf16.mxu0 %vm766_vm0, %v864_v26  ;;  %797 = vmatprep.subr.msk.bf16.mxu1 %vm766_vm0, %v864_v26  ;;  %vm341_vm4 = vcmp.eq.s32.totalorder %v302_v27, %v910_v18 }
  0x9f   : > { %vm339_vm5 = vcmp.eq.s32.totalorder %v299_v28, %v910_v18  ;;  %vm770_vm6 = vmpackc.low %vm342_vm1, %vm340_vm2 }
  0xa0   : > { %vm772_vm9 = vmpackc.low %vm341_vm4, %vm339_vm5 }
  0xa1   : > { %v308_v29 = vpop.permute.xlu1 %307  ;;  %v305_v30 = vpop.permute.xlu0 %304  ;;  %769 = vmatpush1.bf16.msk.msra.mxu0 %vm768_vm3, %v864_v26  ;;  %805 = vmatpush1.bf16.msk.msra.mxu1 %vm768_vm3, %v864_v26 }
  0xa2   : > { %vm346_vm7 = vcmp.eq.s32.totalorder %v308_v29, %v913_v21  ;;  %vm344_vm8 = vcmp.eq.s32.totalorder %v305_v30, %v913_v21  ;;  %771 = vmatprep.subr.msk.bf16.mxu0 %vm770_vm6, %v864_v26  ;;  %798 = vmatprep.subr.msk.bf16.mxu1 %vm770_vm6, %v864_v26  ;;  %vm345_vm10 = vcmp.eq.s32.totalorder %v308_v29, %v910_v18 }
  0xa3   : > { %vm343_vm11 = vcmp.eq.s32.totalorder %v305_v30, %v910_v18  ;;  %vm774_vm12 = vmpackc.low %vm346_vm7, %vm344_vm8 }
  0xa4   : > { %vm776_vm15 = vmpackc.low %vm345_vm10, %vm343_vm11 }
  0xa5   : > { %v314_v31 = vpop.permute.xlu1 %313  ;;  %v311_v32 = vpop.permute.xlu0 %310  ;;  %773 = vmatpush1.bf16.msk.msra.mxu0 %vm772_vm9, %v864_v26  ;;  %806 = vmatpush1.bf16.msk.msra.mxu1 %vm772_vm9, %v864_v26 }
  0xa6   : > { %vm350_vm13 = vcmp.eq.s32.totalorder %v314_v31, %v913_v21  ;;  %vm348_vm14 = vcmp.eq.s32.totalorder %v311_v32, %v913_v21  ;;  %775 = vmatprep.subr.msk.bf16.mxu0 %vm774_vm12, %v864_v26  ;;  %799 = vmatprep.subr.msk.bf16.mxu1 %vm774_vm12, %v864_v26  ;;  %vm349_vm0 = vcmp.eq.s32.totalorder %v314_v31, %v910_v18 }
  0xa7   : > { %vm347_vm1 = vcmp.eq.s32.totalorder %v311_v32, %v910_v18  ;;  %vm778_vm2 = vmpackc.low %vm350_vm13, %vm348_vm14 }
  0xa8   : > { %vm780_vm5 = vmpackc.low %vm349_vm0, %vm347_vm1 }
  0xa9   : > { %v320_v33 = vpop.permute.xlu1 %319  ;;  %v317_v34 = vpop.permute.xlu0 %316  ;;  %777 = vmatpush1.bf16.msk.msra.mxu0 %vm776_vm15, %v864_v26  ;;  %807 = vmatpush1.bf16.msk.msra.mxu1 %vm776_vm15, %v864_v26 }
  0xaa   : > { %vm354_vm3 = vcmp.eq.s32.totalorder %v320_v33, %v913_v21  ;;  %vm352_vm4 = vcmp.eq.s32.totalorder %v317_v34, %v913_v21  ;;  %779 = vmatprep.subr.msk.bf16.mxu0 %vm778_vm2, %v864_v26  ;;  %800 = vmatprep.subr.msk.bf16.mxu1 %vm778_vm2, %v864_v26  ;;  %vm353_vm6 = vcmp.eq.s32.totalorder %v320_v33, %v910_v18 }
  0xab   : > { %vm351_vm7 = vcmp.eq.s32.totalorder %v317_v34, %v910_v18  ;;  %vm782_vm8 = vmpackc.low %vm354_vm3, %vm352_vm4 }
  0xac   : > { %vm784_vm11 = vmpackc.low %vm353_vm6, %vm351_vm7 }
  0xad   : > { %v326_v35 = vpop.permute.xlu1 %325  ;;  %v323_v36 = vpop.permute.xlu0 %322  ;;  %781 = vmatpush1.bf16.msk.msra.mxu0 %vm780_vm5, %v864_v26  ;;  %808 = vmatpush1.bf16.msk.msra.mxu1 %vm780_vm5, %v864_v26 }
  0xae   : > { %vm358_vm9 = vcmp.eq.s32.totalorder %v326_v35, %v913_v21  ;;  %vm356_vm10 = vcmp.eq.s32.totalorder %v323_v36, %v913_v21  ;;  %783 = vmatprep.subr.msk.bf16.mxu0 %vm782_vm8, %v864_v26  ;;  %801 = vmatprep.subr.msk.bf16.mxu1 %vm782_vm8, %v864_v26  ;;  %vm357_vm12 = vcmp.eq.s32.totalorder %v326_v35, %v910_v18 }
  0xaf   : > { %vm355_vm13 = vcmp.eq.s32.totalorder %v323_v36, %v910_v18  ;;  %vm786_vm14 = vmpackc.low %vm358_vm9, %vm356_vm10 }
  0xb0   : > { %vm788_vm15 = vmpackc.low %vm357_vm12, %vm355_vm13 }
  0xb1   : > { %785 = vmatpush1.bf16.msk.msra.mxu0 %vm784_vm11, %v864_v26  ;;  %809 = vmatpush1.bf16.msk.msra.mxu1 %vm784_vm11, %v864_v26 }
  0xb2   : > { %787 = vmatprep.subr.msk.bf16.mxu0 %vm786_vm14, %v864_v26  ;;  %802 = vmatprep.subr.msk.bf16.mxu1 %vm786_vm14, %v864_v26 }
  0xb5   : > { %789 = vmatpush1.bf16.msk.msra.mxu0 %vm788_vm15, %v864_v26  ;;  %810 = vmatpush1.bf16.msk.msra.mxu1 %vm788_vm15, %v864_v26 }
  0xb8   : > { %500 = vmatmul.mubr.bf16.vlgmr.msra.gmra.mrb[0].mxu0 %v447_v41  ;;  %520 = vmatmul.mubr.bf16.vlgmr.msra.gmra.mrb[0].mxu1 %v449_v42 }
  0xb9   : > { %509 = vmatprep.mubr.bf16.mxu0 %v863_v0  ;;  %529 = vmatprep.mubr.bf16.mxu1 %v863_v0 }
  0xc0   : > { %510 = vmatmul.mubr.bf16.gmra.mrb[4].mxu0 %v448_v47  ;;  %530 = vmatmul.mubr.bf16.gmra.mrb[4].mxu1 %v450_v48 }
 0x18b   : > { %v501_v49 = vpop.f32.mrb[0].mxu0  ;;  %v521_v50 = vpop.f32.mrb[0].mxu1 }
 0x18c   : > { %591 = vst [vmem:[%s990_s23] sm:$0xff] %v501_v49  ;;  %599 = vst [vmem:[%s990_s23 + $0x40] sm:$0xff] %v521_v50  ;;  %v503_v51 = vpop.f32.mrb[1].mxu0  ;;  %v523_v52 = vpop.f32.mrb[1].mxu1 }
 0x18d   : > { %592 = vst [vmem:[%s990_s23 + $0x8] sm:$0xff] %v503_v51  ;;  %600 = vst [vmem:[%s990_s23 + $0x48] sm:$0xff] %v523_v52  ;;  %v505_v53 = vpop.f32.mrb[2].mxu0  ;;  %v525_v54 = vpop.f32.mrb[2].mxu1 }
 0x18e   : > { %593 = vst [vmem:[%s990_s23 + $0x10] sm:$0xff] %v505_v53  ;;  %601 = vst [vmem:[%s990_s23 + $0x50] sm:$0xff] %v525_v54  ;;  %v507_v55 = vpop.f32.mrb[3].mxu0  ;;  %v527_v56 = vpop.f32.mrb[3].mxu1 }
 0x18f   : > { %594 = vst [vmem:[%s990_s23 + $0x18] sm:$0xff] %v507_v55  ;;  %602 = vst [vmem:[%s990_s23 + $0x58] sm:$0xff] %v527_v56 }
 0x193   : > { %v511_v57 = vpop.f32.mrb[4].mxu0  ;;  %v531_v58 = vpop.f32.mrb[4].mxu1 }
 0x194   : > { %595 = vst [vmem:[%s990_s23 + $0x20] sm:$0xff] %v511_v57  ;;  %603 = vst [vmem:[%s990_s23 + $0x60] sm:$0xff] %v531_v58  ;;  %v513_v59 = vpop.f32.mrb[5].mxu0  ;;  %v533_v60 = vpop.f32.mrb[5].mxu1 }
 0x195   : > { %596 = vst [vmem:[%s990_s23 + $0x28] sm:$0xff] %v513_v59  ;;  %604 = vst [vmem:[%s990_s23 + $0x68] sm:$0xff] %v533_v60  ;;  %v515_v61 = vpop.f32.mrb[6].mxu0  ;;  %v535_v62 = vpop.f32.mrb[6].mxu1 }
 0x196   : > { %597 = vst [vmem:[%s990_s23 + $0x30] sm:$0xff] %v515_v61  ;;  %605 = vst [vmem:[%s990_s23 + $0x70] sm:$0xff] %v535_v62  ;;  %v517_v63 = vpop.f32.mrb[7].mxu0  ;;  %v537_v0 = vpop.f32.mrb[7].mxu1 }
 0x197   : > { %598 = vst [vmem:[%s990_s23 + $0x38] sm:$0xff] %v517_v63  ;;  %606 = vst [vmem:[%s990_s23 + $0x78] sm:$0xff] %v537_v0 }
 0x198 PF: > { %s12_s11 = sadd.s32 1, %s861_s11   ;;  %s1020_s9 = smov %s857_s10 }
 0x199   : > { %p9_p5 = scmp.ge.s32.totalorder %s12_s11, 4   ;;  %s1021_s10 = smov %s1023_s12 }
 0x19b   :  { %11 = sbr.rel (!%p9_p5) target bundleno = 2 (0x2), region = 69 }

</bundles_post_ra>
